<compile_context>
chip_gen: v5e
topology: v5e:2x2
jax: 0.10.0
libtpu: 0.0.40
codegen_flags: <defaults>
</compile_context>

<pallas_src>
import functools

import jax
import jax.numpy as jnp
from jax import lax
from jax.experimental import pallas as pl
from jax.experimental.pallas import tpu as pltpu


def self_attn_kernel(gamma_ref, x_ref, w_ref, b_ref, out_ref, *, cq, block_b):
    """One grid step handles `block_b` batch elements.

    gamma_ref : (1, 1)  f32 in SMEM
    x_ref     : (block_b, C, N)
    w_ref     : (2*Cq + C, C)   fused [Wq; Wk; Wv]
    b_ref     : (2*Cq + C, 1)   fused [bq; bk; bv]
    out_ref   : (block_b, C, N)
    """
    gamma = gamma_ref[0, 0]
    w = w_ref[...]        # (Ctot, C)
    bias = b_ref[...]     # (Ctot, 1) -> broadcasts along lanes

    # Static unroll over the batch elements of this block (no per-batch grid
    # step overhead; each iteration is pure 2-D matmuls -> clean MXU lowering).
    for bb in range(block_b):
        x = x_ref[bb].astype(jnp.float32)                                 # (C, N)

        # Fused QKV projection: 1x1 Conv1d == W @ x + b over the channel dim.
        qkv = lax.dot_general(w, x, (((1,), (0,)), ((), ())),
                              preferred_element_type=jnp.float32) + bias  # (Ctot, N)
        q = qkv[:cq]                 # (Cq, N)
        k = qkv[cq:2 * cq]           # (Cq, N)
        v = qkv[2 * cq:]             # (C,  N)

        # energy[i, j] = sum_c q[c, i] * k[c, j]  (no explicit transpose).
        energy = lax.dot_general(q, k, (((0,), (0,)), ((), ())),
                                 preferred_element_type=jnp.float32)      # (N, N)

        # Numerically stable softmax over the last dim; the row normalization
        # uses the EUP reciprocal so it does not occupy VALU slots.
        m = jnp.max(energy, axis=-1, keepdims=True)
        p = jnp.exp(energy - m)
        l = jnp.sum(p, axis=-1, keepdims=True)
        attn = p * pl.reciprocal(l, approx=True)                          # (N, N)

        # out[c, i] = sum_j v[c, j] * attn[i, j]  (contract the shared N_j dim,
        # again without an explicit transpose of `attn`).
        out = lax.dot_general(v, attn, (((1,), (1,)), ((), ())),
                              preferred_element_type=jnp.float32)         # (C, N)

        out_ref[bb] = (gamma * out + x).astype(out_ref.dtype)


def _pick_block_b(B, max_block=8):
    bb = min(B, max_block)
    while B % bb:
        bb -= 1
    return bb


def self_attn(x, wq, bq, wk, bk, wv, bv, gamma, *, block_b=None):
    B, C, N = x.shape
    Cq = wq.shape[0]
    Ctot = 2 * Cq + C

    if block_b is None:
        block_b = _pick_block_b(B)

    # Fuse the three projection weights / biases -> one DMA, one matmul.
    w_fused = jnp.concatenate([wq, wk, wv], axis=0)      # (Ctot, C)
    b_fused = jnp.concatenate([bq, bk, bv], axis=0)      # (Ctot, 1)

    kernel = functools.partial(self_attn_kernel, cq=Cq, block_b=block_b)

    return pl.pallas_call(
        kernel,
        out_shape=jax.ShapeDtypeStruct((B, C, N), x.dtype),
        grid=(B // block_b,),
        in_specs=[
            pl.BlockSpec(memory_space=pltpu.MemorySpace.SMEM),      # gamma (1,1)
            pl.BlockSpec((block_b, C, N), lambda i: (i, 0, 0)),     # x block
            pl.BlockSpec((Ctot, C), lambda i: (0, 0)),              # fused W
            pl.BlockSpec((Ctot, 1), lambda i: (0, 0)),              # fused b
        ],
        out_specs=pl.BlockSpec((block_b, C, N), lambda i: (i, 0, 0)),
        compiler_params=pltpu.CompilerParams(
            dimension_semantics=("parallel",)),
    )(gamma, x, w_fused, b_fused)


def self_attn_reference(x, wq, bq, wk, bk, wv, bv, gamma):
    """Pure-JAX reference mirroring the PyTorch forward."""
    q = jnp.einsum('oc,bcn->bon', wq, x) + bq[None, :, :]     # (B, Cq, N)
    k = jnp.einsum('oc,bcn->bon', wk, x) + bk[None, :, :]     # (B, Cq, N)
    v = jnp.einsum('oc,bcn->bon', wv, x) + bv[None, :, :]     # (B, C,  N)
    energy = jnp.einsum('bcq,bck->bqk', q, k)                 # (B, N, N)
    attn = jax.nn.softmax(energy, axis=-1)
    out = jnp.einsum('bcn,bqn->bcq', v, attn)                 # (B, C, N)
    return gamma[0, 0] * out + x


if __name__ == "__main__":
    B, C, N = 2, 32, 16
    Cq = C // 8

    key = jax.random.PRNGKey(0)
    kx, kwq, kbq, kwk, kbk, kwv, kbv = jax.random.split(key, 7)

    x = jax.random.normal(kx, (B, C, N), dtype=jnp.float32)

    # Conv1d(kernel_size=1) weights: (out_ch, in_ch); biases kept as (out_ch, 1).
    scale = 1.0 / jnp.sqrt(C)
    wq = jax.random.normal(kwq, (Cq, C), dtype=jnp.float32) * scale
    bq = jax.random.normal(kbq, (Cq, 1), dtype=jnp.float32) * scale
    wk = jax.random.normal(kwk, (Cq, C), dtype=jnp.float32) * scale
    bk = jax.random.normal(kbk, (Cq, 1), dtype=jnp.float32) * scale
    wv = jax.random.normal(kwv, (C, C), dtype=jnp.float32) * scale
    bv = jax.random.normal(kbv, (C, 1), dtype=jnp.float32) * scale

    # 1) PyTorch __init__ registers gamma = zeros(1): output must equal x path.
    gamma0 = jnp.zeros((1, 1), dtype=jnp.float32)
    out0 = jax.block_until_ready(self_attn(x, wq, bq, wk, bk, wv, bv, gamma0))
    ref0 = self_attn_reference(x, wq, bq, wk, bk, wv, bv, gamma0)
    assert out0.shape == (B, C, N)
    assert jnp.allclose(out0, ref0, atol=1e-5, rtol=1e-5)

    # 2) Non-zero gamma exercises the full attention path (looser tolerance
    #    because the softmax denominator uses the approximate EUP reciprocal).
    gamma1 = jnp.full((1, 1), 0.5, dtype=jnp.float32)
    out1 = jax.block_until_ready(self_attn(x, wq, bq, wk, bk, wv, bv, gamma1))
    ref1 = self_attn_reference(x, wq, bq, wk, bk, wv, bv, gamma1)
    assert jnp.allclose(out1, ref1, atol=2e-3, rtol=2e-3)

    print("KERNEL_OK")
</pallas_src>

<mosaic_0001>
module attributes {stable_mosaic.version = 11 : i64} {
  func.func @self_attn_kernel(%arg0: i32, %arg1: memref<1x1xf32, #tpu.memory_space<smem>>, %arg2: memref<2x32x16xf32, #tpu.memory_space<vmem>>, %arg3: memref<40x32xf32, #tpu.memory_space<vmem>>, %arg4: memref<40x1xf32, #tpu.memory_space<vmem>>, %arg5: memref<2x32x16xf32, #tpu.memory_space<vmem>>) attributes {dimension_semantics = [#tpu.dimension_semantics<parallel>], iteration_bounds = array<i64: 1>, scalar_prefetch = 0 : i64, scratch_operands = 0 : i64, tpu.core_type = #tpu.core_type<tc>, window_params = [{transform_indices = @transform_0, window_bounds = array<i64: 1, 1>}, {transform_indices = @transform_1, window_bounds = array<i64: 2, 32, 16>}, {pipeline_mode = #tpu.pipeline_mode<synchronous>, transform_indices = @transform_2, window_bounds = array<i64: 40, 32>}, {pipeline_mode = #tpu.pipeline_mode<synchronous>, transform_indices = @transform_3, window_bounds = array<i64: 40, 1>}, {transform_indices = @transform_4, window_bounds = array<i64: 2, 32, 16>}]} {
    %c0 = arith.constant 0 : index
    %c0_0 = arith.constant 0 : index
    %0 = memref.load %arg1[%c0, %c0_0] : memref<1x1xf32, #tpu.memory_space<smem>>
    %c0_1 = arith.constant 0 : index
    %c0_2 = arith.constant 0 : index
    %1 = vector.load %arg3[%c0_1, %c0_2] : memref<40x32xf32, #tpu.memory_space<vmem>>, vector<40x32xf32>
    %c0_3 = arith.constant 0 : index
    %c0_4 = arith.constant 0 : index
    %2 = vector.load %arg4[%c0_3, %c0_4] : memref<40x1xf32, #tpu.memory_space<vmem>>, vector<40x1xf32>
    %c0_5 = arith.constant 0 : index
    %c0_6 = arith.constant 0 : index
    %c0_7 = arith.constant 0 : index
    %3 = vector.load %arg2[%c0_5, %c0_6, %c0_7] : memref<2x32x16xf32, #tpu.memory_space<vmem>>, vector<1x32x16xf32>
    %4 = vector.shape_cast %3 : vector<1x32x16xf32> to vector<32x16xf32>
    %cst = arith.constant dense<0.000000e+00> : vector<40x16xf32>
    %5 = tpu.matmul %1, %4, %cst {dimension_numbers = #tpu.dot_dimension_numbers<[1], [0], [0], [1], [0, 0, 1, 1], [], []>} : vector<40x32xf32>, vector<32x16xf32>, vector<40x16xf32> -> vector<40x16xf32>
    %6 = vector.broadcast %2 : vector<40x1xf32> to vector<40x16xf32>
    %7 = arith.addf %5, %6 : vector<40x16xf32>
    %8 = vector.extract_strided_slice %7 {offsets = [0, 0], sizes = [4, 16], strides = [1, 1]} : vector<40x16xf32> to vector<4x16xf32>
    %9 = vector.extract_strided_slice %7 {offsets = [4, 0], sizes = [4, 16], strides = [1, 1]} : vector<40x16xf32> to vector<4x16xf32>
    %10 = vector.extract_strided_slice %7 {offsets = [8, 0], sizes = [32, 16], strides = [1, 1]} : vector<40x16xf32> to vector<32x16xf32>
    %cst_8 = arith.constant dense<0.000000e+00> : vector<16x16xf32>
    %11 = tpu.matmul %8, %9, %cst_8 {dimension_numbers = #tpu.dot_dimension_numbers<[0], [0], [1], [1], [0, 1, 1, 1], [], []>} : vector<4x16xf32>, vector<4x16xf32>, vector<16x16xf32> -> vector<16x16xf32>
    %cst_9 = arith.constant dense<0xFF800000> : vector<16xf32>
    %12 = vector.multi_reduction <maximumf>, %11, %cst_9 [1] : vector<16x16xf32> to vector<16xf32>
    %13 = vector.shape_cast %12 : vector<16xf32> to vector<16x1xf32>
    %14 = vector.broadcast %13 : vector<16x1xf32> to vector<16x16xf32>
    %15 = arith.subf %11, %14 : vector<16x16xf32>
    %16 = math.exp %15 : vector<16x16xf32>
    %cst_10 = arith.constant dense<0.000000e+00> : vector<16xf32>
    %17 = vector.multi_reduction <add>, %16, %cst_10 [1] : vector<16x16xf32> to vector<16xf32>
    %18 = vector.shape_cast %17 : vector<16xf32> to vector<16x1xf32>
    %19 = tpu.reciprocal %18 {approx = true} : vector<16x1xf32> -> vector<16x1xf32>
    %20 = vector.broadcast %19 : vector<16x1xf32> to vector<16x16xf32>
    %21 = arith.mulf %16, %20 : vector<16x16xf32>
    %cst_11 = arith.constant dense<0.000000e+00> : vector<32x16xf32>
    %22 = tpu.matmul %10, %21, %cst_11 {dimension_numbers = #tpu.dot_dimension_numbers<[1], [1], [0], [0], [0, 0, 1, 0], [], []>} : vector<32x16xf32>, vector<16x16xf32>, vector<32x16xf32> -> vector<32x16xf32>
    %23 = vector.broadcast %0 : f32 to vector<32x16xf32>
    %24 = arith.mulf %23, %22 : vector<32x16xf32>
    %25 = arith.addf %24, %4 : vector<32x16xf32>
    %c0_12 = arith.constant 0 : index
    %c0_13 = arith.constant 0 : index
    %c0_14 = arith.constant 0 : index
    %26 = vector.load %arg5[%c0_12, %c0_13, %c0_14] : memref<2x32x16xf32, #tpu.memory_space<vmem>>, vector<1x32x16xf32>
    %27 = vector.shape_cast %26 : vector<1x32x16xf32> to vector<32x16xf32>
    %28 = vector.shape_cast %25 : vector<32x16xf32> to vector<1x32x16xf32>
    tpu.vector_store %arg5[%c0_12, %c0_13, %c0_14], %28 {strides = array<i32>} : memref<2x32x16xf32, #tpu.memory_space<vmem>>, vector<1x32x16xf32>,
    %c1 = arith.constant 1 : index
    %c0_15 = arith.constant 0 : index
    %c0_16 = arith.constant 0 : index
    %29 = vector.load %arg2[%c1, %c0_15, %c0_16] : memref<2x32x16xf32, #tpu.memory_space<vmem>>, vector<1x32x16xf32>
    %30 = vector.shape_cast %29 : vector<1x32x16xf32> to vector<32x16xf32>
    %cst_17 = arith.constant dense<0.000000e+00> : vector<40x16xf32>
    %31 = tpu.matmul %1, %30, %cst_17 {dimension_numbers = #tpu.dot_dimension_numbers<[1], [0], [0], [1], [0, 0, 1, 1], [], []>} : vector<40x32xf32>, vector<32x16xf32>, vector<40x16xf32> -> vector<40x16xf32>
    %32 = vector.broadcast %2 : vector<40x1xf32> to vector<40x16xf32>
    %33 = arith.addf %31, %32 : vector<40x16xf32>
    %34 = vector.extract_strided_slice %33 {offsets = [0, 0], sizes = [4, 16], strides = [1, 1]} : vector<40x16xf32> to vector<4x16xf32>
    %35 = vector.extract_strided_slice %33 {offsets = [4, 0], sizes = [4, 16], strides = [1, 1]} : vector<40x16xf32> to vector<4x16xf32>
    %36 = vector.extract_strided_slice %33 {offsets = [8, 0], sizes = [32, 16], strides = [1, 1]} : vector<40x16xf32> to vector<32x16xf32>
    %cst_18 = arith.constant dense<0.000000e+00> : vector<16x16xf32>
    %37 = tpu.matmul %34, %35, %cst_18 {dimension_numbers = #tpu.dot_dimension_numbers<[0], [0], [1], [1], [0, 1, 1, 1], [], []>} : vector<4x16xf32>, vector<4x16xf32>, vector<16x16xf32> -> vector<16x16xf32>
    %cst_19 = arith.constant dense<0xFF800000> : vector<16xf32>
    %38 = vector.multi_reduction <maximumf>, %37, %cst_19 [1] : vector<16x16xf32> to vector<16xf32>
    %39 = vector.shape_cast %38 : vector<16xf32> to vector<16x1xf32>
    %40 = vector.broadcast %39 : vector<16x1xf32> to vector<16x16xf32>
    %41 = arith.subf %37, %40 : vector<16x16xf32>
    %42 = math.exp %41 : vector<16x16xf32>
    %cst_20 = arith.constant dense<0.000000e+00> : vector<16xf32>
    %43 = vector.multi_reduction <add>, %42, %cst_20 [1] : vector<16x16xf32> to vector<16xf32>
    %44 = vector.shape_cast %43 : vector<16xf32> to vector<16x1xf32>
    %45 = tpu.reciprocal %44 {approx = true} : vector<16x1xf32> -> vector<16x1xf32>
    %46 = vector.broadcast %45 : vector<16x1xf32> to vector<16x16xf32>
    %47 = arith.mulf %42, %46 : vector<16x16xf32>
    %cst_21 = arith.constant dense<0.000000e+00> : vector<32x16xf32>
    %48 = tpu.matmul %36, %47, %cst_21 {dimension_numbers = #tpu.dot_dimension_numbers<[1], [1], [0], [0], [0, 0, 1, 0], [], []>} : vector<32x16xf32>, vector<16x16xf32>, vector<32x16xf32> -> vector<32x16xf32>
    %49 = vector.broadcast %0 : f32 to vector<32x16xf32>
    %50 = arith.mulf %49, %48 : vector<32x16xf32>
    %51 = arith.addf %50, %30 : vector<32x16xf32>
    %c1_22 = arith.constant 1 : index
    %c0_23 = arith.constant 0 : index
    %c0_24 = arith.constant 0 : index
    %52 = vector.load %arg5[%c1_22, %c0_23, %c0_24] : memref<2x32x16xf32, #tpu.memory_space<vmem>>, vector<1x32x16xf32>
    %53 = vector.shape_cast %52 : vector<1x32x16xf32> to vector<32x16xf32>
    %54 = vector.shape_cast %51 : vector<32x16xf32> to vector<1x32x16xf32>
    tpu.vector_store %arg5[%c1_22, %c0_23, %c0_24], %54 {strides = array<i32>} : memref<2x32x16xf32, #tpu.memory_space<vmem>>, vector<1x32x16xf32>,
    return
  }
  func.func @transform_0(%arg0: i32) -> (i32, i32) {
    %c0_i32 = arith.constant 0 : i32
    %c0_i32_0 = arith.constant 0 : i32
    %c0_i32_1 = arith.constant 0 : i32
    return %c0_i32, %c0_i32_0 : i32, i32
  }
  func.func @transform_1(%arg0: i32) -> (i32, i32, i32) {
    %c0_i32 = arith.constant 0 : i32
    %c0_i32_0 = arith.constant 0 : i32
    %c0_i32_1 = arith.constant 0 : i32
    return %arg0, %c0_i32, %c0_i32_0 : i32, i32, i32
  }
  func.func @transform_2(%arg0: i32) -> (i32, i32) {
    %c0_i32 = arith.constant 0 : i32
    %c0_i32_0 = arith.constant 0 : i32
    %c0_i32_1 = arith.constant 0 : i32
    return %c0_i32, %c0_i32_0 : i32, i32
  }
  func.func @transform_3(%arg0: i32) -> (i32, i32) {
    %c0_i32 = arith.constant 0 : i32
    %c0_i32_0 = arith.constant 0 : i32
    %c0_i32_1 = arith.constant 0 : i32
    return %c0_i32, %c0_i32_0 : i32, i32
  }
  func.func @transform_4(%arg0: i32) -> (i32, i32, i32) {
    %c0_i32 = arith.constant 0 : i32
    %c0_i32_0 = arith.constant 0 : i32
    %c0_i32_1 = arith.constant 0 : i32
    return %arg0, %c0_i32, %c0_i32_0 : i32, i32, i32
  }
}

</mosaic_0001>

<bundles_post_ra>
// kernel: tpu_custom_call.1
= control target key start
LH: loop header
LB: loop body
LE: loop exit
PB: predicated region body
PF: predicated region fallthrough
CT: control target
= control target key end

     0   :  { %v500_v3 = vmov 0   ;;  %vm58_vm0 = vcmask 261120   ;;  %vm147_vm1 = vcmask 1043456   ;;  %vm140_vm2 = vcmask 31744   ;;  %s677_s1 = inlined_call_operand.vmem [shape: f32[2,32,16], index: 1, kind: input, shape index: {}]   ;;  %s678_s3 = inlined_call_operand.vmem [shape: f32[40,1], index: 3, kind: input, shape index: {}]   ;;  %s679_s2 = inlined_call_operand.vmem [shape: f32[40,32], index: 2, kind: input, shape index: {}]   ;;  %s680_s0 = inlined_call_operand.<no memory space> [shape: f32[1,1], index: 0, kind: input, shape index: {}]   ;;  %s681_s4 = inlined_call_operand.vmem [shape: f32[2,32,16], index: 4, kind: output, shape index: {}]  }
   0x1   :  { %v529_v0 = vld [vmem:[%s677_s1 + $0x18] sm:$0xff]  ;;  %v539_v2 = vld [vmem:[%s677_s1 + $0x10] sm:$0xff]  ;;  %482 = vset.pattern.permute.xlu0 %v500_v3  ;;  %483 = vset.pattern.permute.xlu2 %v500_v3  ;;  %v551_v5 = vld [vmem:[%s677_s1 + $0x8] sm:$0xff]  ;;  %vm173_vm3 = vcmask 130048  }
   0x2   :  { %v534_v1 = vld [vmem:[%s677_s1 + $0x38] sm:$0xff]  ;;  %86 = vmatpush.msra.mxu0 %v529_v0  ;;  %v546_v4 = vld [vmem:[%s677_s1 + $0x30] sm:$0xff]  ;;  %v556_v6 = vld [vmem:[%s677_s1 + $0x28] sm:$0xff] }
   0x3   :  { %273 = vmatpush.msra.mxu3 %v534_v1  ;;  %v24_v7 = vld [vmem:[%s678_s3] sm:$0xff]  ;;  %v20_v30 = vld [vmem:[%s679_s2 + $0x8] sm:$0xff]  ;;  %v21_v31 = vld [vmem:[%s679_s2 + $0x10] sm:$0xff] }
   0x4   :  { %87 = vmatpush.msra.mxu0 %v539_v2  ;;  %v566_v8 = vld [vmem:[%s677_s1] sm:$0xff]  ;;  %35 = vperm.xlu0 %482, %v24_v7   ;;  %v22_v32 = vld [vmem:[%s679_s2 + $0x18] sm:$0xff]  ;;  %v25_v44 = vld [vmem:[%s678_s3 + $0x8] sm:$0xff] }
   0x5   :  { %274 = vmatpush.msra.mxu3 %v546_v4  ;;  %v571_v9 = vld [vmem:[%s677_s1 + $0x20] sm:$0xff]  ;;  %v26_v45 = vld [vmem:[%s678_s3 + $0x10] sm:$0xff]  ;;  %v27_v46 = vld [vmem:[%s678_s3 + $0x18] sm:$0xff] }
   0x6   :  { %88 = vmatpush.msra.mxu0 %v551_v5  ;;  %v19_v10 = vld [vmem:[%s679_s2] sm:$0xff] }
   0x7   :  { %275 = vmatpush.msra.mxu3 %v556_v6  ;;  %v23_v43 = vld [vmem:[%s679_s2 + $0x20] sm:$0xff] }
   0x8   :  { %89 = vmatpush.msra.mxu0 %v566_v8  ;;  %v28_v57 = vld [vmem:[%s678_s3 + $0x20] sm:$0xff] }
   0x9   :  { %276 = vmatpush.msra.mxu3 %v571_v9  ;;  %444 = vmatmul.msk.f32.vlgmr.msra.gmra.mxu0 %vm58_vm0, %v19_v10 }
   0xa   :  { %462 = vmatmul.msk.f32.vlgmr.msra.gmra.mxu3 %vm58_vm0, %v19_v10 }
  0x11   :  { %445 = vmatmul.msk.f32.gmra.mxu0 %vm58_vm0, %v20_v30 }
  0x12   :  { %463 = vmatmul.msk.f32.gmra.mxu3 %vm58_vm0, %v20_v30 }
  0x19   :  { %446 = vmatmul.msk.f32.gmra.mxu0 %vm58_vm0, %v21_v31 }
  0x1a   :  { %464 = vmatmul.msk.f32.gmra.mxu3 %vm58_vm0, %v21_v31 }
  0x21   :  { %447 = vmatmul.msk.f32.gmra.mxu0 %vm58_vm0, %v22_v32 }
  0x22   :  { %465 = vmatmul.msk.f32.gmra.mxu3 %vm58_vm0, %v22_v32 }
  0x29   :  { %448 = vmatmul.msk.f32.gmra.mxu0 %vm58_vm0, %v23_v43 }
  0x2a   :  { %466 = vmatmul.msk.f32.gmra.mxu3 %vm58_vm0, %v23_v43 }
  0x76   :  { %v36_v11 = vpop.permute.xlu0 %35 }
  0x86   :  { %v91_v12 = vpop.f32.mrf.mxu0 }
  0x87   :  { %v92_v13 = vadd.f32 %v91_v12, %v36_v11 }
  0x89   :  { %106 = vxpose.xlu0.b32.start.end [1/1] (short) (narrow) %v92_v13, 16  ;;  %v139_v14 = vrot.slane %v92_v13, 4 }
  0x8b   :  { %449 = vmatpush.msk.msra.mxu2 %vm147_vm1, %v139_v14 }
  0x8d   :  { %v278_v15 = vpop.f32.mrf.mxu3 }
  0x8e   :  { %v279_v16 = vadd.f32 %v278_v15, %v36_v11  ;;  %v94_v3 = vpop.f32.mrf.mxu0 }
  0x90   :  { %293 = vxpose.xlu1.b32.start.end [1/1] (short) (narrow) %v279_v16, 16  ;;  %v326_v17 = vrot.slane %v279_v16, 4 }
  0x92   :  { %467 = vmatpush.msk.msra.mxu1 %vm147_vm1, %v326_v17 }
  0x95   :  { %v281_v15 = vpop.f32.mrf.mxu3 }
 0x12d   :  { %v122_v18 = vpop.trf.xlu0 }
 0x12e   :  { %450 = vmatmul.msk.f32.vlgmr.msra.gmra.mxu2 %vm140_vm2, %v122_v18 }
 0x134   :  { %v309_v19 = vpop.trf.xlu1 }
 0x135   :  { %468 = vmatmul.msk.f32.vlgmr.msra.gmra.mxu1 %vm140_vm2, %v309_v19  ;;  %v123_v20 = vpop.trf.xlu0  ;;  %v97_v19 = vpop.f32.mrf.mxu0 }
 0x136   :  { %451 = vmatmul.msk.f32.gmra.mxu2 %vm140_vm2, %v123_v20 }
 0x13c   :  { %v310_v21 = vpop.trf.xlu1 }
 0x13d   :  { %469 = vmatmul.msk.f32.gmra.mxu1 %vm140_vm2, %v310_v21 }
 0x1b1   :  { %v167_v22 = vpop.f32.mrf.mxu2 }
 0x1b2   :  { %v174_v23 = vsel %vm173_vm3, %v167_v22, -inf  ;;  %v352_v24 = vpop.f32.mrf.mxu1 }
 0x1b3   :  { %175 = vmax.xlane.f32.xlu2 %v174_v23  ;;  %v358_v25 = vsel %vm173_vm3, %v352_v24, -inf  ;;  %v284_v23 = vpop.f32.mrf.mxu3 }
 0x1b9   :  { %v170_v26 = vpop.f32.mrf.mxu2 }
 0x1ba   :  { %v177_v27 = vsel %vm173_vm3, %v170_v26, -inf  ;;  %v355_v28 = vpop.f32.mrf.mxu1 }
 0x1bb   :  { %359 = vmax.xlane.f32.xlu2 %v358_v25  ;;  %178 = vmax.xlane.f32.xlu1 %v177_v27  ;;  %v361_v29 = vsel %vm173_vm3, %v355_v28, -inf  ;;  %v287_v27 = vpop.f32.mrf.mxu3 }
 0x1c3   :  { %362 = vmax.xlane.f32.xlu2 %v361_v29  ;;  %v290_v32 = vpop.f32.mrf.mxu3 }
 0x226   :  { %v176_v33 = vpop.xlane.xlu2 %175 }
 0x227   :  { %v180_v34 = vsub.f32 %v167_v22, %v176_v33 }
 0x229   :  { %v182_v35 = vmul.f32 1.442695, %v180_v34  ;;  %v243_v34 = vstv %s680_s0 }
 0x22b   :  { %484 = vpow2.f32 %v182_v35 }
 0x22e   :  { %v360_v36 = vpop.xlane.xlu2 %359  ;;  %v179_v47 = vpop.xlane.xlu1 %178 }
 0x22f   :  { %v364_v37 = vsub.f32 %v352_v24, %v360_v36  ;;  %v181_v48 = vsub.f32 %v170_v26, %v179_v47  ;;  %v100_v24 = vpop.f32.mrf.mxu0 }
 0x231   :  { %v485_v38 = vpop.eup %484  ;;  %v366_v39 = vmul.f32 1.442695, %v364_v37  ;;  %v184_v49 = vmul.f32 1.442695, %v181_v48 }
 0x232   :  { %v186_v40 = vsel %vm173_vm3, %v485_v38, 0.0 }
 0x233   :  { %486 = vpow2.f32 %v366_v39  ;;  %187 = vadd.xlane.f32.xlu2 %v186_v40 }
 0x234   :  { %488 = vpow2.f32 %v184_v49 }
 0x236   :  { %v363_v50 = vpop.xlane.xlu2 %362 }
 0x237   :  { %v365_v51 = vsub.f32 %v355_v28, %v363_v50  ;;  %v103_v28 = vpop.f32.mrf.mxu0 }
 0x239   :  { %v487_v41 = vpop.eup %486  ;;  %v368_v52 = vmul.f32 1.442695, %v365_v51 }
 0x23a   :  { %v370_v42 = vsel %vm173_vm3, %v487_v41, 0.0  ;;  %v489_v53 = vpop.eup %488 }
 0x23b   :  { %371 = vadd.xlane.f32.xlu0 %v370_v42  ;;  %490 = vpow2.f32 %v368_v52  ;;  %v189_v54 = vsel %vm173_vm3, %v489_v53, 0.0 }
 0x241   :  { %v491_v55 = vpop.eup %490 }
 0x242   :  { %v373_v56 = vsel %vm173_vm3, %v491_v55, 0.0 }
 0x24b   :  { %40 = vperm.xlu2 %483, %v25_v44  }
 0x253   :  { %45 = vperm.xlu2 %483, %v26_v45  }
 0x25b   :  { %50 = vperm.xlu2 %483, %v27_v46  }
 0x284   :  { %190 = vadd.xlane.f32.xlu2 %v189_v54 }
 0x28c   :  { %374 = vadd.xlane.f32.xlu2 %v373_v56 }
 0x2a4   :  { %55 = vperm.xlu2 %483, %v28_v57  }
 0x2a6   :  { %v188_v58 = vpop.xlane.xlu2 %187 }
 0x2ae   :  { %v41_v59 = vpop.permute.xlu2 %40  ;;  %v372_v7 = vpop.xlane.xlu0 %371 }
 0x2af   :  { %v95_v16 = vadd.f32 %v94_v3, %v41_v59  ;;  %v282_v21 = vadd.f32 %v281_v15, %v41_v59 }
 0x2b6   :  { %v46_v60 = vpop.permute.xlu2 %45 }
 0x2b7   :  { %v98_v22 = vadd.f32 %v97_v19, %v46_v60  ;;  %v285_v25 = vadd.f32 %v284_v23, %v46_v60 }
 0x2be   :  { %v51_v61 = vpop.permute.xlu2 %50 }
 0x2bf   :  { %v101_v26 = vadd.f32 %v100_v24, %v51_v61  ;;  %v288_v30 = vadd.f32 %v287_v27, %v51_v61 }
 0x2f7   :  { %v191_v62 = vpop.xlane.xlu2 %190 }
 0x2f8   :  { %492 = vrcp.f32 %v191_v62 }
 0x2f9   :  { %494 = vrcp.f32 %v188_v58 }
 0x2fe   :  { %v493_v63 = vpop.eup %492 }
 0x2ff   :  { %v375_v10 = vpop.xlane.xlu2 %374  ;;  %v195_v11 = vmul.f32 %v493_v63, %v489_v53  ;;  %v495_v12 = vpop.eup %494 }
 0x300   :  { %496 = vrcp.f32 %v375_v10  ;;  %v194_v13 = vmul.f32 %v495_v12, %v485_v38 }
 0x301   :  { %452 = vmatpush.xpose.msk.msrb.mxu2 %vm173_vm3, %v195_v11  ;;  %498 = vrcp.f32 %v372_v7 }
 0x305   :  { %453 = vmatpush.xpose.msk.msrb.mxu2 %vm173_vm3, %v194_v13 }
 0x306   :  { %v497_v14 = vpop.eup %496 }
 0x307   :  { %v379_v17 = vmul.f32 %v497_v14, %v491_v55  ;;  %v499_v18 = vpop.eup %498  ;;  %v56_v29 = vpop.permute.xlu2 %55 }
 0x308   :  { %454 = vmatmul.msk.f32.vlgmr.msrb.gmra.mxu2 %vm173_vm3, %v95_v16  ;;  %v378_v20 = vmul.f32 %v499_v18, %v487_v41  ;;  %v104_v31 = vadd.f32 %v103_v28, %v56_v29  ;;  %v291_v33 = vadd.f32 %v290_v32, %v56_v29 }
 0x309   :  { %470 = vmatpush.xpose.msk.msrb.mxu1 %vm173_vm3, %v379_v17 }
 0x30d   :  { %471 = vmatpush.xpose.msk.msrb.mxu1 %vm173_vm3, %v378_v20 }
 0x310   :  { %455 = vmatmul.msk.f32.gmra.mxu2 %vm173_vm3, %v98_v22  ;;  %472 = vmatmul.msk.f32.vlgmr.msrb.gmra.mxu1 %vm173_vm3, %v282_v21 }
 0x318   :  { %456 = vmatmul.msk.f32.gmra.mxu2 %vm173_vm3, %v101_v26  ;;  %473 = vmatmul.msk.f32.gmra.mxu1 %vm173_vm3, %v285_v25 }
 0x320   :  { %457 = vmatmul.msk.f32.gmra.mxu2 %vm173_vm3, %v104_v31  ;;  %474 = vmatmul.msk.f32.gmra.mxu1 %vm173_vm3, %v288_v30 }
 0x328   :  { %475 = vmatmul.msk.f32.gmra.mxu1 %vm173_vm3, %v291_v33 }
 0x38b   :  { %v231_v35 = vpop.f32.mrf.mxu2 }
 0x38c   :  { %v244_v36 = vmul.f32 %v243_v34, %v231_v35 }
 0x38d   :  { %v415_v37 = vpop.f32.mrf.mxu1 }
 0x38e   :  { %v248_v38 = vadd.f32 %v244_v36, %v566_v8  ;;  %v427_v39 = vmul.f32 %v415_v37, %v243_v34 }
 0x390   :  { %252 = vst.msk [vmem:[%s681_s4] sm:$0xff] %vm173_vm3, %v248_v38  ;;  %v431_v40 = vadd.f32 %v571_v9, %v427_v39 }
 0x392   :  { %476 = vst.msk [vmem:[%s681_s4 + $0x20] sm:$0xff] %vm173_vm3, %v431_v40 }
 0x393   :  { %v234_v41 = vpop.f32.mrf.mxu2 }
 0x394   :  { %v245_v42 = vmul.f32 %v243_v34, %v234_v41 }
 0x395   :  { %v418_v43 = vpop.f32.mrf.mxu1 }
 0x396   :  { %v249_v44 = vadd.f32 %v245_v42, %v551_v5  ;;  %v428_v45 = vmul.f32 %v418_v43, %v243_v34 }
 0x398   :  { %253 = vst.msk [vmem:[%s681_s4 + $0x8] sm:$0xff] %vm173_vm3, %v249_v44  ;;  %v432_v8 = vadd.f32 %v556_v6, %v428_v45 }
 0x39a   :  { %477 = vst.msk [vmem:[%s681_s4 + $0x28] sm:$0xff] %vm173_vm3, %v432_v8 }
 0x39b   :  { %v237_v9 = vpop.f32.mrf.mxu2 }
 0x39c   :  { %v246_v46 = vmul.f32 %v243_v34, %v237_v9 }
 0x39d   :  { %v421_v47 = vpop.f32.mrf.mxu1 }
 0x39e   :  { %v250_v48 = vadd.f32 %v246_v46, %v539_v2  ;;  %v429_v49 = vmul.f32 %v421_v47, %v243_v34 }
 0x3a0   :  { %254 = vst.msk [vmem:[%s681_s4 + $0x10] sm:$0xff] %vm173_vm3, %v250_v48  ;;  %v433_v5 = vadd.f32 %v546_v4, %v429_v49 }
 0x3a2   :  { %478 = vst.msk [vmem:[%s681_s4 + $0x30] sm:$0xff] %vm173_vm3, %v433_v5 }
 0x3a3   :  { %v240_v6 = vpop.f32.mrf.mxu2 }
 0x3a4   :  { %v247_v50 = vmul.f32 %v243_v34, %v240_v6 }
 0x3a5   :  { %v424_v51 = vpop.f32.mrf.mxu1 }
 0x3a6   :  { %v251_v52 = vadd.f32 %v247_v50, %v529_v0  ;;  %v430_v53 = vmul.f32 %v424_v51, %v243_v34 }
 0x3a8   :  { %255 = vst.msk [vmem:[%s681_s4 + $0x18] sm:$0xff] %vm173_vm3, %v251_v52  ;;  %v434_v2 = vadd.f32 %v534_v1, %v430_v53 }
 0x3aa   :  { %479 = vst.msk [vmem:[%s681_s4 + $0x38] sm:$0xff] %vm173_vm3, %v434_v2 }

</bundles_post_ra>
